<compile_context>
chip_gen: v7x
topology: tpu7x:2x2x1
jax: 0.10.0
libtpu: 0.0.40
codegen_flags: <defaults>
</compile_context>

<pallas_src>
import functools

import jax
import jax.numpy as jnp
from jax.experimental import pallas as pl
from jax.experimental.pallas import tpu as pltpu

_LANE = 128
_SUBLANE = 8
_DEFAULT_TILE_M = 512
_VMEM_LIMIT = 48 * 1024 * 1024  # headroom under v7x's 64 MiB physical VMEM


def _round_up(n, m):
    return (n + m - 1) // m * m


def _pad2d(a, rows, cols):
    r, c = a.shape
    if r == rows and c == cols:
        return a
    return jnp.pad(a, ((0, rows - r), (0, cols - c)))


# ----------------------------------------------------------------------------
# Kernels
# ----------------------------------------------------------------------------
def _linear_record_kernel(x_ref, w_ref, b_ref, z_ref, buf_ref):
    # z = x @ W_t + b   (W_t already transposed + padded outside the kernel)
    x = x_ref[...]                                   # f32 for the elementwise path
    z = jnp.dot(x.astype(w_ref.dtype), w_ref[...],
                preferred_element_type=jnp.float32) + b_ref[...]
    z_ref[...] = z.astype(z_ref.dtype)
    # buffer = z / x ; NaN entries (0/0) -> 0   (matches buffer[buffer != buffer] = 0)
    r = z / x
    buf_ref[...] = jnp.where(r != r, 0.0, r).astype(buf_ref.dtype)


def _linear_identity_kernel(x_ref, w_ref, b_ref, z_ref):
    x = x_ref[...]
    z = jnp.dot(x.astype(w_ref.dtype), w_ref[...],
                preferred_element_type=jnp.float32) + b_ref[...]
    z_ref[...] = z.astype(z_ref.dtype)


def _replay_kernel(buf_ref, x_ref, u_ref, o_ref, *, dropout_p):
    # y = dropout(buffer * x); keep iff u >= p, scale survivors by 1/(1-p).
    y = buf_ref[...] * x_ref[...]
    if dropout_p <= 0.0:
        o_ref[...] = y.astype(o_ref.dtype)
    else:
        scale = 1.0 / (1.0 - dropout_p) if dropout_p < 1.0 else 0.0
        keep = u_ref[...] >= jnp.float32(dropout_p)
        o_ref[...] = jnp.where(keep, y * jnp.float32(scale), 0.0).astype(o_ref.dtype)


# ----------------------------------------------------------------------------
# pallas_call wrappers (1-D grid over rows; weight/bias resident in VMEM)
# ----------------------------------------------------------------------------
_COMPILER_PARAMS = pltpu.CompilerParams(
    dimension_semantics=("parallel",),
    vmem_limit_bytes=_VMEM_LIMIT,
)


def _row_spec(tile_m, hp):
    return pl.BlockSpec((tile_m, hp), lambda i: (i, 0))


def _record_call(xp, wt, bp, tile_m):
    Mp, Hp = xp.shape
    rs = _row_spec(tile_m, Hp)
    return pl.pallas_call(
        _linear_record_kernel,
        out_shape=(jax.ShapeDtypeStruct((Mp, Hp), jnp.float32),
                   jax.ShapeDtypeStruct((Mp, Hp), jnp.float32)),
        grid=(Mp // tile_m,),
        in_specs=[rs,
                  pl.BlockSpec((Hp, Hp), lambda i: (0, 0)),   # weight: resident
                  pl.BlockSpec((1, Hp), lambda i: (0, 0))],   # bias:   resident
        out_specs=(rs, rs),
        compiler_params=_COMPILER_PARAMS,
    )(xp, wt, bp)


def _identity_call(xp, wt, bp, tile_m):
    Mp, Hp = xp.shape
    rs = _row_spec(tile_m, Hp)
    return pl.pallas_call(
        _linear_identity_kernel,
        out_shape=jax.ShapeDtypeStruct((Mp, Hp), jnp.float32),
        grid=(Mp // tile_m,),
        in_specs=[rs,
                  pl.BlockSpec((Hp, Hp), lambda i: (0, 0)),
                  pl.BlockSpec((1, Hp), lambda i: (0, 0))],
        out_specs=rs,
        compiler_params=_COMPILER_PARAMS,
    )(xp, wt, bp)


def _replay_call(bufp, xp, up, tile_m, dropout_p):
    Mp, Hp = xp.shape
    rs = _row_spec(tile_m, Hp)
    kernel = functools.partial(_replay_kernel, dropout_p=float(dropout_p))
    return pl.pallas_call(
        kernel,
        out_shape=jax.ShapeDtypeStruct((Mp, Hp), jnp.float32),
        grid=(Mp // tile_m,),
        in_specs=[rs, rs, rs],
        out_specs=rs,
        compiler_params=_COMPILER_PARAMS,
    )(bufp, xp, up)


# ----------------------------------------------------------------------------
# Recorder module (stateful wrapper mirroring the PyTorch class)
# ----------------------------------------------------------------------------
class Recorder:
    def __init__(self, weight, bias, dropout_p=0.5, tile_m=_DEFAULT_TILE_M,
                 matmul_dtype=jnp.float32):
        w = jnp.asarray(weight, jnp.float32)            # (H_out, H_in), PyTorch layout
        b = jnp.asarray(bias, jnp.float32)
        h_out, h_in = w.shape
        assert h_out == h_in, "Recorder demo wraps a square Linear(H, H)"
        self.h = h_in
        self.hp = _round_up(max(self.h, _LANE), _LANE)  # lane-dense feature dim
        # Pre-transpose + zero-pad the weight ONCE (kernel computes x @ W_t).
        # TODO(synk): for very large H also tile the weight over K/N instead of
        # keeping the full (Hp, Hp) block resident in VMEM.
        wt = jnp.zeros((self.hp, self.hp), jnp.float32).at[: self.h, : self.h].set(w.T)
        self.wt = wt.astype(matmul_dtype)
        self.b = jnp.zeros((1, self.hp), jnp.float32).at[0, : self.h].set(b)
        self.dropout_p = float(dropout_p)
        self.tile_m = int(tile_m)
        self.isRecord = False
        self.isReplay = False
        self.buffer = None         # user-visible buffer, original shape
        self._buf_pad = None       # padded (Mp, Hp) copy kept for fast replay

    def switchToRecord(self):
        self.isReplay, self.isRecord = False, True

    def switchToReplay(self):
        self.isReplay, self.isRecord = True, False

    def switchToIdentity(self):
        self.isReplay, self.isRecord = False, False

    def _tiling(self, M):
        tm = min(self.tile_m, _round_up(M, _SUBLANE))
        Mp = _round_up(M, tm)
        return tm, Mp

    def __call__(self, x, key=None):
        shape = x.shape
        H = shape[-1]
        assert H == self.h
        x2d = x.reshape(-1, H).astype(jnp.float32)
        M = x2d.shape[0]
        tm, Mp = self._tiling(M)
        xp = _pad2d(x2d, Mp, self.hp)

        if self.isRecord:
            zp, bufp = _record_call(xp, self.wt, self.b, tm)
            self._buf_pad = bufp
            self.buffer = bufp[:M, :H].reshape(shape)
            return zp[:M, :H].reshape(shape)

        if self.isReplay:
            if self._buf_pad is not None and self._buf_pad.shape == (Mp, self.hp):
                bufp = self._buf_pad
            else:
                bufp = _pad2d(self.buffer.reshape(-1, H).astype(jnp.float32),
                              Mp, self.hp)
            if key is None:
                key = jax.random.PRNGKey(0)
            u = jax.random.uniform(key, (Mp, self.hp), jnp.float32)
            out = _replay_call(bufp, xp, u, tm, self.dropout_p)
            return out[:M, :H].reshape(shape)

        zp = _identity_call(xp, self.wt, self.b, tm)
        return zp[:M, :H].reshape(shape)


# ----------------------------------------------------------------------------
# Main
# ----------------------------------------------------------------------------
if __name__ == "__main__":
    B, S, H = 2, 8, 32
    key = jax.random.PRNGKey(0)
    kx, kw, kb, kd = jax.random.split(key, 4)

    x = jax.random.normal(kx, (B, S, H), jnp.float32)
    # deterministic Linear(H, H) params
    w = jax.random.normal(kw, (H, H), jnp.float32) * 0.1
    b = jax.random.normal(kb, (H,), jnp.float32) * 0.1

    rec = Recorder(w, b, dropout_p=0.5)

    # --- record mode ---
    rec.switchToRecord()
    z = rec(x)
    jax.block_until_ready(z)
    z_ref = x @ w.T + b
    r_ref = z_ref / x
    buf_ref = jnp.where(jnp.isnan(r_ref), 0.0, r_ref)
    assert jnp.allclose(z, z_ref, atol=1e-4, rtol=1e-4)
    assert jnp.allclose(rec.buffer, buf_ref, atol=1e-4, rtol=1e-4)

    # --- replay mode (stochastic dropout; check dropped==0, survivors scaled 2x) ---
    rec.switchToReplay()
    y = rec(x, key=kd)
    jax.block_until_ready(y)
    assert y.shape == x.shape
    prod = rec.buffer * x
    nonzero = y != 0
    assert jnp.allclose(jnp.where(nonzero, y, 0.0),
                        jnp.where(nonzero, 2.0 * prod, 0.0), atol=1e-4, rtol=1e-4)

    # --- identity mode ---
    rec.switchToIdentity()
    z2 = rec(x)
    jax.block_until_ready(z2)
    assert jnp.allclose(z2, z_ref, atol=1e-4, rtol=1e-4)

    print("KERNEL_OK")
</pallas_src>

<mosaic_0001>
module attributes {stable_mosaic.version = 11 : i64} {
  func.func @_linear_record_kernel(%arg0: i32, %arg1: memref<16x128xf32, #tpu.memory_space<vmem>>, %arg2: memref<128x128xf32, #tpu.memory_space<vmem>>, %arg3: memref<1x128xf32, #tpu.memory_space<vmem>>, %arg4: memref<16x128xf32, #tpu.memory_space<vmem>>, %arg5: memref<16x128xf32, #tpu.memory_space<vmem>>) attributes {dimension_semantics = [#tpu.dimension_semantics<parallel>], iteration_bounds = array<i64: 1>, scalar_prefetch = 0 : i64, scratch_operands = 0 : i64, tpu.core_type = #tpu.core_type<tc>, window_params = [{transform_indices = @transform_0, window_bounds = array<i64: 16, 128>}, {pipeline_mode = #tpu.pipeline_mode<synchronous>, transform_indices = @transform_1, window_bounds = array<i64: 128, 128>}, {pipeline_mode = #tpu.pipeline_mode<synchronous>, transform_indices = @transform_2, window_bounds = array<i64: 1, 128>}, {transform_indices = @transform_3, window_bounds = array<i64: 16, 128>}, {transform_indices = @transform_4, window_bounds = array<i64: 16, 128>}]} {
    %c0 = arith.constant 0 : index
    %c0_0 = arith.constant 0 : index
    %0 = vector.load %arg1[%c0, %c0_0] : memref<16x128xf32, #tpu.memory_space<vmem>>, vector<16x128xf32>
    %c0_1 = arith.constant 0 : index
    %c0_2 = arith.constant 0 : index
    %1 = vector.load %arg2[%c0_1, %c0_2] : memref<128x128xf32, #tpu.memory_space<vmem>>, vector<128x128xf32>
    %cst = arith.constant dense<0.000000e+00> : vector<16x128xf32>
    %2 = tpu.matmul %0, %1, %cst {dimension_numbers = #tpu.dot_dimension_numbers<[1], [0], [0], [1], [0, 0, 1, 1], [], []>} : vector<16x128xf32>, vector<128x128xf32>, vector<16x128xf32> -> vector<16x128xf32>
    %c0_3 = arith.constant 0 : index
    %c0_4 = arith.constant 0 : index
    %3 = vector.load %arg3[%c0_3, %c0_4] : memref<1x128xf32, #tpu.memory_space<vmem>>, vector<1x128xf32>
    %4 = vector.broadcast %3 : vector<1x128xf32> to vector<16x128xf32>
    %5 = arith.addf %2, %4 : vector<16x128xf32>
    %c0_5 = arith.constant 0 : index
    %c0_6 = arith.constant 0 : index
    %6 = vector.load %arg4[%c0_5, %c0_6] : memref<16x128xf32, #tpu.memory_space<vmem>>, vector<16x128xf32>
    tpu.vector_store %arg4[%c0_5, %c0_6], %5 {strides = array<i32>} : memref<16x128xf32, #tpu.memory_space<vmem>>, vector<16x128xf32>,
    %7 = arith.divf %5, %0 : vector<16x128xf32>
    %8 = arith.cmpf one, %7, %7 : vector<16x128xf32>
    %cst_7 = arith.constant 0.000000e+00 : f32
    %9 = vector.broadcast %cst_7 : f32 to vector<16x128xf32>
    %10 = arith.select %8, %9, %7 : vector<16x128xi1>, vector<16x128xf32>
    %c0_8 = arith.constant 0 : index
    %c0_9 = arith.constant 0 : index
    %11 = vector.load %arg5[%c0_8, %c0_9] : memref<16x128xf32, #tpu.memory_space<vmem>>, vector<16x128xf32>
    tpu.vector_store %arg5[%c0_8, %c0_9], %10 {strides = array<i32>} : memref<16x128xf32, #tpu.memory_space<vmem>>, vector<16x128xf32>,
    return
  }
  func.func @transform_0(%arg0: i32) -> (i32, i32) {
    %c0_i32 = arith.constant 0 : i32
    %c0_i32_0 = arith.constant 0 : i32
    return %arg0, %c0_i32 : i32, i32
  }
  func.func @transform_1(%arg0: i32) -> (i32, i32) {
    %c0_i32 = arith.constant 0 : i32
    %c0_i32_0 = arith.constant 0 : i32
    %c0_i32_1 = arith.constant 0 : i32
    return %c0_i32, %c0_i32_0 : i32, i32
  }
  func.func @transform_2(%arg0: i32) -> (i32, i32) {
    %c0_i32 = arith.constant 0 : i32
    %c0_i32_0 = arith.constant 0 : i32
    %c0_i32_1 = arith.constant 0 : i32
    return %c0_i32, %c0_i32_0 : i32, i32
  }
  func.func @transform_3(%arg0: i32) -> (i32, i32) {
    %c0_i32 = arith.constant 0 : i32
    %c0_i32_0 = arith.constant 0 : i32
    return %arg0, %c0_i32 : i32, i32
  }
  func.func @transform_4(%arg0: i32) -> (i32, i32) {
    %c0_i32 = arith.constant 0 : i32
    %c0_i32_0 = arith.constant 0 : i32
    return %arg0, %c0_i32 : i32, i32
  }
}

</mosaic_0001>

<bundles_post_ra>
// kernel: tpu_custom_call.1
= control target key start
LH: loop header
LB: loop body
LE: loop exit
PB: predicated region body
PF: predicated region fallthrough
CT: control target
= control target key end

     0   :  { %10 = vsyncpa [#allocation3], 0  ;;  %s478_s0 = inlined_call_operand.hbm [shape: f32[16,128], index: 0, kind: input, shape index: {}]   ;;  %s479_s1 = inlined_call_operand.hbm [shape: f32[128,128], index: 1, kind: input, shape index: {}]   ;;  %s480_s2 = inlined_call_operand.vmem [shape: f32[1,128], index: 2, kind: input, shape index: {}]   ;;  %s481_s3 = inlined_call_operand.hbm [shape: f32[16,128], index: 3, kind: output, shape index: {0}]   ;;  %s482_s4 = inlined_call_operand.hbm [shape: f32[16,128], index: 4, kind: output, shape index: {1}]  }
   0x1   :  { %11 = vsyncpa [#allocation6], 0 }
   0x2   :  { %12 = vsyncpa [#allocation4], 0 }
   0x3   :  { %13 = vsyncpa [#allocation9], 0  ;;  %s384_s15 = smov [#allocation2]   ;;  %s288_s19 = scalar_lea.hbm %s478_s0, 256 }
   0x4   :  { %s19_s16 = sshll.u32 %s384_s15, 4  ;;  %p289_p0 = scmp.ne.s32.totalorder %s478_s0, %s288_s19  ;;  %s20_s16 = int_to_ptr.vmem [resolvable:$true] %s19_s16 }
   0x5   :  { %p292_p1 = scmp.lt.u32.totalorder %s288_s19, %s478_s0 }
   0x7   :  { %p294_p2 = pnand %p292_p1, %p289_p0 }
   0x9   :  { %297 = shalt.err (!%p294_p2)
}
   0xa   :  { %s298_s24 = scalar_lea.vmem %s20_s16, 256  ;;  %p303_p4 = scmp.lt.s32.totalorder %s20_s16, %s20_s16 }
   0xb   :  { %p299_p3 = scmp.ne.s32.totalorder %s20_s16, %s298_s24  ;;  %p304_p5 = scmp.lt.s32.totalorder %s298_s24, %s298_s24 }
   0xd   :  { %p305_p6 = por %p304_p5, %p303_p4 }
   0xf   :  { %p306_p7 = pnand %p305_p6, %p299_p3 }
  0x11   :  { %309 = shalt.err (!%p306_p7)
}
  0x12   :  { %s385_s25 = smov 128   ;;  %s386_s26 = smov 8  }
  0x13   :  { %25 = dma.hbm_to_vmem [thread:$0]  %s478_s0, 256, %s20_s16, [#allocation3], %s385_s25, %s385_s25, %s386_s26  }
  0x14   :  { %s387_s29 = smov [#allocation5]   ;;  %s310_s7 = scalar_lea.hbm %s479_s1, 2048 }
  0x15   :  { %s31_s30 = sshll.u32 %s387_s29, 4  ;;  %p311_p8 = scmp.ne.s32.totalorder %s479_s1, %s310_s7  ;;  %s32_s30 = int_to_ptr.vmem [resolvable:$true] %s31_s30 }
  0x16   :  { %p314_p9 = scmp.lt.u32.totalorder %s310_s7, %s479_s1 }
  0x18   :  { %p316_p10 = pnand %p314_p9, %p311_p8 }
  0x1a   :  { %319 = shalt.err (!%p316_p10)
}
  0x1b   :  { %s320_s12 = scalar_lea.vmem %s32_s30, 2048  ;;  %p325_p12 = scmp.lt.s32.totalorder %s32_s30, %s32_s30 }
  0x1c   :  { %p321_p11 = scmp.ne.s32.totalorder %s32_s30, %s320_s12  ;;  %p326_p13 = scmp.lt.s32.totalorder %s320_s12, %s320_s12 }
  0x1e   :  { %p327_p0 = por %p326_p13, %p325_p12 }
  0x20   :  { %p328_p1 = pnand %p327_p0, %p321_p11 }
  0x22   :  { %331 = shalt.err (!%p328_p1)
}
  0x23   :  { %37 = dma.hbm_to_vmem [thread:$0]  %s479_s1, 2048, %s32_s30, [#allocation6], %s385_s25, %s385_s25, %s386_s26  }
  0x24   :  { %376 = dma.done.wait [#allocation3], 256  }
  0x25   :  { %377 = vsyncadd [#allocation3], 4294967040 }
  0x26   :  { %378 = dma.done.wait [#allocation6], 2048  }
  0x27   :  { %379 = vsyncadd [#allocation6], 4294965248  ;;  %v48_v0 = vld [vmem:[#allocation5] sm:$0xff]  ;;  %v49_v1 = vld [vmem:[#allocation5 + $0x8] sm:$0xff]  ;;  %s388_s15 = smov [#allocation7]   ;;  %s389_s17 = smov [#allocation8]  }
  0x28   :  { %v50_v2 = vld [vmem:[#allocation5 + $0x10] sm:$0xff]  ;;  %v246_v3 = vpack.c.bf16 %v49_v1, %v48_v0  ;;  %v51_v4 = vld [vmem:[#allocation5 + $0x18] sm:$0xff]  ;;  %v52_v6 = vld [vmem:[#allocation5 + $0x20] sm:$0xff]  ;;  %s163_s16 = sshll.u32 %s388_s15, 4  ;;  %s175_s18 = sshll.u32 %s389_s17, 4  ;;  %s164_s16 = int_to_ptr.vmem [resolvable:$true] %s163_s16  ;;  %s176_s18 = int_to_ptr.vmem [resolvable:$true] %s175_s18 }
  0x29   :  { %v250_v5 = vpack.c.bf16 %v51_v4, %v50_v2  ;;  %v53_v7 = vld [vmem:[#allocation5 + $0x28] sm:$0xff]  ;;  %v46_v9 = vld [vmem:[#allocation2] sm:$0xff]  ;;  %v55_v11 = vld [vmem:[#allocation5 + $0x38] sm:$0xff]  ;;  %s332_s19 = scalar_lea.vmem %s164_s16, 256  ;;  %p337_p3 = scmp.lt.s32.totalorder %s164_s16, %s164_s16 }
  0x2a   :  { %247 = vmatprep.subr.bf16.mxu0 %v246_v3  ;;  %v254_v8 = vpack.c.bf16 %v53_v7, %v52_v6  ;;  %v54_v10 = vld [vmem:[#allocation5 + $0x30] sm:$0xff]  ;;  %243 = vmatprep.mubr.f32.mxu0 %v46_v9  ;;  %v56_v13 = vld [vmem:[#allocation5 + $0x40] sm:$0xff]  ;;  %v57_v14 = vld [vmem:[#allocation5 + $0x48] sm:$0xff]  ;;  %p333_p2 = scmp.ne.s32.totalorder %s164_s16, %s332_s19  ;;  %p338_p4 = scmp.lt.s32.totalorder %s332_s19, %s332_s19 }
  0x2b   :  { %249 = vmatpush3.bf16.msra.mxu0 %v246_v3  ;;  %v258_v12 = vpack.c.bf16 %v55_v11, %v54_v10  ;;  %v262_v15 = vpack.c.bf16 %v57_v14, %v56_v13  ;;  %v58_v16 = vld [vmem:[#allocation5 + $0x50] sm:$0xff]  ;;  %v59_v17 = vld [vmem:[#allocation5 + $0x58] sm:$0xff]  ;;  %v60_v19 = vld [vmem:[#allocation5 + $0x60] sm:$0xff] }
  0x2c   :  { %251 = vmatprep.subr.bf16.mxu0 %v250_v5  ;;  %v266_v18 = vpack.c.bf16 %v59_v17, %v58_v16  ;;  %v61_v20 = vld [vmem:[#allocation5 + $0x68] sm:$0xff]  ;;  %v62_v22 = vld [vmem:[#allocation5 + $0x70] sm:$0xff]  ;;  %v63_v23 = vld [vmem:[#allocation5 + $0x78] sm:$0xff]  ;;  %p339_p5 = por %p338_p4, %p337_p3 }
  0x2d   :  { %v270_v21 = vpack.c.bf16 %v61_v20, %v60_v19  ;;  %v274_v24 = vpack.c.bf16 %v63_v23, %v62_v22  ;;  %v47_v25 = vld [vmem:[#allocation2 + $0x8] sm:$0xff]  ;;  %v192_v26 = vld [vmem:[%s480_s2] ss:$0 sm:$0xff] }
  0x2e   :  { %284 = vrcp.f32 %v47_v25  ;;  %p340_p6 = pnand %p339_p5, %p333_p2 }
  0x2f   :  { %253 = vmatpush3.bf16.msra.mxu0 %v250_v5  ;;  %286 = vrcp.f32 %v46_v9 }
  0x30   :  { %255 = vmatprep.subr.bf16.mxu0 %v254_v8 }
  0x33   :  { %257 = vmatpush3.bf16.msra.mxu0 %v254_v8 }
  0x34   :  { %259 = vmatprep.subr.bf16.mxu0 %v258_v12 }
  0x37   :  { %261 = vmatpush3.bf16.msra.mxu0 %v258_v12 }
  0x38   :  { %263 = vmatprep.subr.bf16.mxu0 %v262_v15  ;;  %v285_v27 = vpop.eup %284 }
  0x39   :  { %v287_v29 = vpop.eup %286 }
  0x3b   :  { %265 = vmatpush3.bf16.msra.mxu0 %v262_v15 }
  0x3c   :  { %267 = vmatprep.subr.bf16.mxu0 %v266_v18 }
  0x3f   :  { %269 = vmatpush3.bf16.msra.mxu0 %v266_v18 }
  0x40   :  { %271 = vmatprep.subr.bf16.mxu0 %v270_v21 }
  0x43   :  { %273 = vmatpush3.bf16.msra.mxu0 %v270_v21 }
  0x44   :  { %275 = vmatprep.subr.bf16.mxu0 %v274_v24 }
  0x47   :  { %277 = vmatpush3.bf16.msra.mxu0 %v274_v24 }
  0x4a   :  { %244 = vmatmul.mubr.f32.vlgmr.msra.gmra.mrb[0].mxu0 %v47_v25 }
 0x11d   :  { %v245_v28 = vpop.f32.mrb[0].mxu0 }
 0x11e   :  { %v143_v30 = vadd.f32 %v245_v28, %v192_v26  ;;  %v137_v31 = vpop.f32.mrb[1].mxu0 }
 0x11f   :  { %v138_v32 = vadd.f32 %v192_v26, %v137_v31 }
 0x120   :  { %147 = vst [vmem:[#allocation7 + $0x8] sm:$0xff] %v143_v30  ;;  %v151_v33 = vmul.f32 %v285_v27, %v143_v30 }
 0x121   :  { %146 = vst [vmem:[#allocation7] sm:$0xff] %v138_v32  ;;  %v149_v34 = vmul.f32 %v287_v29, %v138_v32 }
 0x122   :  { %vm153_vm0 = vcmp.ne.f32.partialorder %v151_v33, %v151_v33 }
 0x123   :  { %343 = shalt.err (!%p340_p6)
}
 0x124   :  { %s344_s21 = scalar_lea.hbm %s481_s3, 256 }
 0x125   :  { %p345_p7 = scmp.ne.s32.totalorder %s481_s3, %s344_s21  ;;  %p348_p8 = scmp.lt.u32.totalorder %s344_s21, %s481_s3 }
 0x127   :  { %p350_p9 = pnand %p348_p8, %p345_p7 }
 0x129   :  { %353 = shalt.err (!%p350_p9)
}
 0x12a   :  { %169 = dma.vmem_to_hbm [thread:$0]  %s164_s16, 256, %s481_s3, [#allocation4], %s385_s25, %s385_s25, %s386_s26   ;;  %vm152_vm1 = vcmp.ne.f32.partialorder %v149_v34, %v149_v34  ;;  %v155_v35 = vsel %vm153_vm0, 0.0, %v151_v33 }
 0x12b   :  { %v154_v36 = vsel %vm152_vm1, 0.0, %v149_v34  ;;  %157 = vst [vmem:[#allocation8 + $0x8] sm:$0xff] %v155_v35  ;;  %s354_s30 = scalar_lea.vmem %s176_s18, 256  ;;  %p359_p11 = scmp.lt.s32.totalorder %s176_s18, %s176_s18 }
 0x12c   :  { %156 = vst [vmem:[#allocation8] sm:$0xff] %v154_v36  ;;  %p355_p10 = scmp.ne.s32.totalorder %s176_s18, %s354_s30  ;;  %p360_p12 = scmp.lt.s32.totalorder %s354_s30, %s354_s30 }
 0x12e   :  { %p361_p13 = por %p360_p12, %p359_p11 }
 0x130   :  { %p362_p0 = pnand %p361_p13, %p355_p10 }
 0x132   :  { %365 = shalt.err (!%p362_p0)
}
 0x133   :  { %s366_s7 = scalar_lea.hbm %s482_s4, 256 }
 0x134   :  { %p367_p1 = scmp.ne.s32.totalorder %s482_s4, %s366_s7  ;;  %p370_p2 = scmp.lt.u32.totalorder %s366_s7, %s482_s4 }
 0x136   :  { %p372_p3 = pnand %p370_p2, %p367_p1 }
 0x138   :  { %375 = shalt.err (!%p372_p3)
}
 0x139   :  { %181 = dma.vmem_to_hbm [thread:$0]  %s176_s18, 256, %s482_s4, [#allocation9], %s385_s25, %s385_s25, %s386_s26  }
 0x13a   :  { %380 = dma.done.wait [#allocation4], 256  }
 0x13b   :  { %381 = vsyncadd [#allocation4], 4294967040 }
 0x13c   :  { %382 = dma.done.wait [#allocation9], 256  }
 0x13d   :  { %383 = vsyncadd [#allocation9], 4294967040 }
 0x13e   :  { %188 = vsyncpa [#allocation3], 1 }
 0x13f   :  { %189 = vsyncpa [#allocation6], 1 }
 0x140   :  { %190 = vsyncpa [#allocation4], 1 }
 0x141   :  { %191 = vsyncpa [#allocation9], 1 }

</bundles_post_ra>
